<compile_context>
chip_gen: v7x
topology: tpu7x:2x2x1
jax: 0.10.0
libtpu: 0.0.40
codegen_flags: <defaults>
</compile_context>

<pallas_src>
import functools

import jax
import jax.numpy as jnp
from jax import lax
from jax.experimental import pallas as pl
from jax.experimental.pallas import tpu as pltpu


def _round_up(x, m):
    return ((x + m - 1) // m) * m


def _choose_tb(batch, n_classes, itemsize):
    """Row tile: keep double-buffered logits tile under ~16 MiB, cap at 1024."""
    budget = 16 * 1024 * 1024
    rows = budget // (2 * max(int(n_classes), 1) * int(itemsize))
    rows = int(max(8, min(1024, rows)))
    rows = (rows // 8) * 8
    # Don't use a tile taller than the (8-aligned-down) batch.
    rows = min(rows, max(8, (batch // 8) * 8))
    return max(8, rows)


def _acloss_kernel(logits_ref, target_ref, loss_ref, count_ref, *,
                   temperature, ignore_index, batch, tb):
    i = pl.program_id(0)

    x = logits_ref[...].astype(jnp.float32)        # (TB, C)
    t = target_ref[...]                            # (TB, 1) int32
    TB, C = x.shape

    # Scrub rows beyond the real batch (the ragged last block is read as a
    # partial DMA; out-of-bounds sublanes may contain stale VMEM garbage).
    row = i * tb + lax.broadcasted_iota(jnp.int32, (TB, 1), 0)
    row_ok = row < batch
    x = jnp.where(row_ok, x, 0.0)

    col = lax.broadcasted_iota(jnp.int32, (TB, C), 1)
    tmask = col == t                                # (TB, C) bool, one-hot of target

    # Strongest non-target logit and the target logit (2 lane reductions).
    mmax = jnp.max(jnp.where(tmask, -jnp.inf, x), axis=1, keepdims=True)
    logit_t = jnp.sum(jnp.where(tmask, x, 0.0), axis=1, keepdims=True)

    # softmax probability of the target class (1 more lane reduction).
    m = jnp.maximum(mmax, logit_t)                  # row max without extra reduce
    sumexp = jnp.sum(jnp.exp(x - m), axis=1, keepdims=True)
    lse = m + jnp.log(sumexp)
    p_t = jnp.exp(logit_t - lse)
    intensity = 1.0 - p_t                           # (TB, 1)

    # CE over the doubly-masked "final" logits collapses to a softplus.
    z = mmax + temperature * intensity - logit_t
    per_sample = jnp.maximum(z, 0.0) + jnp.log(1.0 + jnp.exp(-jnp.abs(z)))

    valid = jnp.logical_and(row_ok, t != ignore_index).astype(jnp.float32)
    block_loss = jnp.sum(per_sample * valid)
    block_count = jnp.sum(valid)

    # Lane-dense partial-sum outputs (one f32 vreg per block, unmasked store).
    loss_ref[...] = jnp.full(loss_ref.shape, block_loss, dtype=jnp.float32)
    count_ref[...] = jnp.full(count_ref.shape, block_count, dtype=jnp.float32)


def ac_loss(logits, target, temperature=1.0, ignore_index=-100, tb=None):
    """Mean ACLoss over the batch (PyTorch ACLoss.forward), via Pallas TPU."""
    B, C = logits.shape
    if logits.dtype != jnp.float32 and logits.dtype != jnp.bfloat16:
        logits = logits.astype(jnp.float32)
    target = target.astype(jnp.int32)

    if tb is None:
        tb = _choose_tb(B, C, jnp.dtype(logits.dtype).itemsize)
    tb = max(8, (int(tb) // 8) * 8)

    nb = pl.cdiv(B, tb)
    Bp = nb * tb
    # Only the tiny target vector is padded (ignored rows); logits stay as-is.
    target_p = jnp.pad(target, (0, Bp - B),
                       constant_values=ignore_index).reshape(Bp, 1)

    kernel = functools.partial(
        _acloss_kernel,
        temperature=float(temperature),
        ignore_index=int(ignore_index),
        batch=int(B),
        tb=int(tb),
    )

    loss_part, cnt_part = pl.pallas_call(
        kernel,
        out_shape=(jax.ShapeDtypeStruct((nb, 8, 128), jnp.float32),
                   jax.ShapeDtypeStruct((nb, 8, 128), jnp.float32)),
        grid_spec=pltpu.PrefetchScalarGridSpec(
            num_scalar_prefetch=0,
            grid=(nb,),
            in_specs=[pl.BlockSpec((tb, C), lambda i: (i, 0)),
                      pl.BlockSpec((tb, 1), lambda i: (i, 0))],
            out_specs=[pl.BlockSpec((1, 8, 128), lambda i: (i, 0, 0)),
                       pl.BlockSpec((1, 8, 128), lambda i: (i, 0, 0))],
        ),
        compiler_params=pltpu.CompilerParams(
            dimension_semantics=("parallel",),
            vmem_limit_bytes=32 * 1024 * 1024),
    )(logits, target_p)

    loss_sum = jnp.sum(loss_part[:, 0, 0])
    count = jnp.sum(cnt_part[:, 0, 0])
    # reduction='mean' with ignore_index: sum over valid rows / #valid rows.
    # (If every row is ignored this yields NaN, matching F.cross_entropy.)
    return loss_sum / count


def _ac_loss_ref(logits, target, temperature=1.0, ignore_index=-100):
    """Pure-JAX reference mirroring the PyTorch forward exactly."""
    B, C = logits.shape
    valid = target != ignore_index
    safe_t = jnp.where(valid, target, 0)
    target_mask = jax.nn.one_hot(safe_t, C, dtype=logits.dtype)
    masked = logits - 9999.0 * target_mask
    res_max = jnp.argmax(masked, axis=1)
    resmax_mask = jax.nn.one_hot(res_max, C, dtype=logits.dtype)
    probs = jax.nn.softmax(logits, axis=1)
    intensity = 1.0 - jnp.take_along_axis(probs, safe_t[:, None], axis=1)
    adjusted = logits + temperature * (1.0 - target_mask) * intensity
    final = adjusted - 9999.0 * (1.0 - target_mask - resmax_mask)
    logp = jax.nn.log_softmax(final, axis=1)
    nll = -jnp.take_along_axis(logp, safe_t[:, None], axis=1)[:, 0]
    v = valid.astype(logits.dtype)
    return jnp.sum(nll * v) / jnp.sum(v)


if __name__ == "__main__":
    key = jax.random.PRNGKey(0)
    k1, k2, k3, k4 = jax.random.split(key, 4)

    # Test 1: small batch, all targets valid (typical use of the module).
    B, C = 8, 32
    logits = jax.random.normal(k1, (B, C), dtype=jnp.float32)
    target = jax.random.randint(k2, (B,), 0, C, dtype=jnp.int32)
    loss = jax.block_until_ready(ac_loss(logits, target, temperature=1.0))
    ref = _ac_loss_ref(logits, target, temperature=1.0)
    assert jnp.allclose(loss, ref, rtol=1e-5, atol=1e-5), (loss, ref)

    # Test 2: ragged batch (not a multiple of the row tile) + ignored rows.
    B2, C2 = 20, 32
    logits2 = 3.0 * jax.random.normal(k3, (B2, C2), dtype=jnp.float32)
    target2 = jax.random.randint(k4, (B2,), 0, C2, dtype=jnp.int32)
    target2 = target2.at[3].set(-100).at[17].set(-100)
    loss2 = jax.block_until_ready(ac_loss(logits2, target2, temperature=0.7))
    ref2 = _ac_loss_ref(logits2, target2, temperature=0.7)
    assert jnp.allclose(loss2, ref2, rtol=1e-5, atol=1e-5), (loss2, ref2)

    print("KERNEL_OK")
</pallas_src>

<mosaic_0001>
module attributes {stable_mosaic.version = 11 : i64} {
  func.func @_acloss_kernel(%arg0: i32, %arg1: memref<8x32xf32, #tpu.memory_space<vmem>>, %arg2: memref<8x1xi32, #tpu.memory_space<vmem>>, %arg3: memref<1x8x128xf32, #tpu.memory_space<vmem>>, %arg4: memref<1x8x128xf32, #tpu.memory_space<vmem>>) attributes {dimension_semantics = [#tpu.dimension_semantics<parallel>], iteration_bounds = array<i64: 1>, scalar_prefetch = 0 : i64, scratch_operands = 0 : i64, tpu.core_type = #tpu.core_type<tc>, window_params = [{transform_indices = @transform_0, window_bounds = array<i64: 8, 32>}, {transform_indices = @transform_1, window_bounds = array<i64: 8, 1>}, {transform_indices = @transform_2, window_bounds = array<i64: 1, 8, 128>}, {transform_indices = @transform_3, window_bounds = array<i64: 1, 8, 128>}]} {
    %c0 = arith.constant 0 : index
    %c0_0 = arith.constant 0 : index
    %0 = vector.load %arg1[%c0, %c0_0] : memref<8x32xf32, #tpu.memory_space<vmem>>, vector<8x32xf32>
    %c0_1 = arith.constant 0 : index
    %c0_2 = arith.constant 0 : index
    %1 = vector.load %arg2[%c0_1, %c0_2] : memref<8x1xi32, #tpu.memory_space<vmem>>, vector<8x1xi32>
    %c8_i32 = arith.constant 8 : i32
    %2 = arith.muli %arg0, %c8_i32 : i32
    %3 = tpu.iota {dimensions = array<i32: 0>} : vector<8x1xi32>
    %4 = vector.broadcast %2 : i32 to vector<8x1xi32>
    %5 = arith.addi %4, %3 : vector<8x1xi32>
    %c8_i32_3 = arith.constant 8 : i32
    %6 = vector.broadcast %c8_i32_3 : i32 to vector<8x1xi32>
    %7 = arith.cmpi slt, %5, %6 : vector<8x1xi32>
    %cst = arith.constant 0.000000e+00 : f32
    %8 = vector.shape_cast %7 : vector<8x1xi1> to vector<8x1xi1>
    %9 = vector.broadcast %8 : vector<8x1xi1> to vector<8x32xi1>
    %10 = vector.broadcast %cst : f32 to vector<8x32xf32>
    %11 = arith.select %9, %0, %10 : vector<8x32xi1>, vector<8x32xf32>
    %12 = tpu.iota {dimensions = array<i32: 1>} : vector<8x32xi32>
    %13 = vector.broadcast %1 : vector<8x1xi32> to vector<8x32xi32>
    %14 = arith.cmpi eq, %12, %13 : vector<8x32xi32>
    %cst_4 = arith.constant 0xFF800000 : f32
    %15 = vector.broadcast %cst_4 : f32 to vector<8x32xf32>
    %16 = arith.select %14, %15, %11 : vector<8x32xi1>, vector<8x32xf32>
    %cst_5 = arith.constant dense<0xFF800000> : vector<8xf32>
    %17 = vector.multi_reduction <maximumf>, %16, %cst_5 [1] : vector<8x32xf32> to vector<8xf32>
    %18 = vector.shape_cast %17 : vector<8xf32> to vector<8x1xf32>
    %cst_6 = arith.constant 0.000000e+00 : f32
    %19 = vector.broadcast %cst_6 : f32 to vector<8x32xf32>
    %20 = arith.select %14, %11, %19 : vector<8x32xi1>, vector<8x32xf32>
    %cst_7 = arith.constant dense<0.000000e+00> : vector<8xf32>
    %21 = vector.multi_reduction <add>, %20, %cst_7 [1] : vector<8x32xf32> to vector<8xf32>
    %22 = vector.shape_cast %21 : vector<8xf32> to vector<8x1xf32>
    %23 = arith.maximumf %18, %22 : vector<8x1xf32>
    %24 = vector.broadcast %23 : vector<8x1xf32> to vector<8x32xf32>
    %25 = arith.subf %11, %24 : vector<8x32xf32>
    %26 = math.exp %25 : vector<8x32xf32>
    %cst_8 = arith.constant dense<0.000000e+00> : vector<8xf32>
    %27 = vector.multi_reduction <add>, %26, %cst_8 [1] : vector<8x32xf32> to vector<8xf32>
    %28 = vector.shape_cast %27 : vector<8xf32> to vector<8x1xf32>
    %29 = math.log %28 : vector<8x1xf32>
    %30 = arith.addf %23, %29 : vector<8x1xf32>
    %31 = arith.subf %22, %30 : vector<8x1xf32>
    %32 = math.exp %31 : vector<8x1xf32>
    %cst_9 = arith.constant 1.000000e+00 : f32
    %33 = vector.broadcast %cst_9 : f32 to vector<8x1xf32>
    %34 = arith.subf %33, %32 : vector<8x1xf32>
    %cst_10 = arith.constant 1.000000e+00 : f32
    %35 = vector.broadcast %cst_10 : f32 to vector<8x1xf32>
    %36 = arith.mulf %35, %34 : vector<8x1xf32>
    %37 = arith.addf %18, %36 : vector<8x1xf32>
    %38 = arith.subf %37, %22 : vector<8x1xf32>
    %cst_11 = arith.constant 0.000000e+00 : f32
    %39 = vector.broadcast %cst_11 : f32 to vector<8x1xf32>
    %40 = arith.maximumf %38, %39 : vector<8x1xf32>
    %41 = math.absf %38 : vector<8x1xf32>
    %cst_12 = arith.constant 0.000000e+00 : f32
    %42 = vector.broadcast %cst_12 : f32 to vector<8x1xf32>
    %43 = arith.subf %42, %41 : vector<8x1xf32>
    %44 = math.exp %43 : vector<8x1xf32>
    %cst_13 = arith.constant 1.000000e+00 : f32
    %45 = vector.broadcast %cst_13 : f32 to vector<8x1xf32>
    %46 = arith.addf %45, %44 : vector<8x1xf32>
    %47 = math.log %46 : vector<8x1xf32>
    %48 = arith.addf %40, %47 : vector<8x1xf32>
    %c-100_i32 = arith.constant -100 : i32
    %49 = vector.broadcast %c-100_i32 : i32 to vector<8x1xi32>
    %50 = arith.cmpi ne, %1, %49 : vector<8x1xi32>
    %51 = arith.andi %7, %50 : vector<8x1xi1>
    %52 = arith.extui %51 : vector<8x1xi1> to vector<8x1xi32>
    %53 = arith.sitofp %52 : vector<8x1xi32> to vector<8x1xf32>
    %54 = arith.mulf %48, %53 : vector<8x1xf32>
    %55 = vector.shape_cast %54 : vector<8x1xf32> to vector<1x8x1xf32>
    %cst_14 = arith.constant dense<0.000000e+00> : vector<1xf32>
    %56 = vector.multi_reduction <add>, %55, %cst_14 [1, 2] : vector<1x8x1xf32> to vector<1xf32>
    %57 = vector.shape_cast %56 : vector<1xf32> to vector<1x1x1xf32>
    %58 = vector.extract %57[0, 0, 0] : f32 from vector<1x1x1xf32>
    %59 = vector.shape_cast %53 : vector<8x1xf32> to vector<1x8x1xf32>
    %cst_15 = arith.constant dense<0.000000e+00> : vector<1xf32>
    %60 = vector.multi_reduction <add>, %59, %cst_15 [1, 2] : vector<1x8x1xf32> to vector<1xf32>
    %61 = vector.shape_cast %60 : vector<1xf32> to vector<1x1x1xf32>
    %62 = vector.extract %61[0, 0, 0] : f32 from vector<1x1x1xf32>
    %63 = vector.broadcast %58 : f32 to vector<1x8x128xf32>
    %c0_16 = arith.constant 0 : index
    %c0_17 = arith.constant 0 : index
    %c0_18 = arith.constant 0 : index
    %64 = vector.load %arg3[%c0_16, %c0_17, %c0_18] : memref<1x8x128xf32, #tpu.memory_space<vmem>>, vector<1x8x128xf32>
    tpu.vector_store %arg3[%c0_16, %c0_17, %c0_18], %63 {strides = array<i32>} : memref<1x8x128xf32, #tpu.memory_space<vmem>>, vector<1x8x128xf32>,
    %65 = vector.broadcast %62 : f32 to vector<1x8x128xf32>
    %c0_19 = arith.constant 0 : index
    %c0_20 = arith.constant 0 : index
    %c0_21 = arith.constant 0 : index
    %66 = vector.load %arg4[%c0_19, %c0_20, %c0_21] : memref<1x8x128xf32, #tpu.memory_space<vmem>>, vector<1x8x128xf32>
    tpu.vector_store %arg4[%c0_19, %c0_20, %c0_21], %65 {strides = array<i32>} : memref<1x8x128xf32, #tpu.memory_space<vmem>>, vector<1x8x128xf32>,
    return
  }
  func.func @transform_0(%arg0: i32) -> (i32, i32) {
    %c0_i32 = arith.constant 0 : i32
    %c0_i32_0 = arith.constant 0 : i32
    return %arg0, %c0_i32 : i32, i32
  }
  func.func @transform_1(%arg0: i32) -> (i32, i32) {
    %c0_i32 = arith.constant 0 : i32
    %c0_i32_0 = arith.constant 0 : i32
    return %arg0, %c0_i32 : i32, i32
  }
  func.func @transform_2(%arg0: i32) -> (i32, i32, i32) {
    %c0_i32 = arith.constant 0 : i32
    %c0_i32_0 = arith.constant 0 : i32
    %c0_i32_1 = arith.constant 0 : i32
    return %arg0, %c0_i32, %c0_i32_0 : i32, i32, i32
  }
  func.func @transform_3(%arg0: i32) -> (i32, i32, i32) {
    %c0_i32 = arith.constant 0 : i32
    %c0_i32_0 = arith.constant 0 : i32
    %c0_i32_1 = arith.constant 0 : i32
    return %arg0, %c0_i32, %c0_i32_0 : i32, i32, i32
  }
}

</mosaic_0001>

<bundles_post_ra>
// kernel: tpu_custom_call.1
= control target key start
LH: loop header
LB: loop body
LE: loop exit
PB: predicated region body
PF: predicated region fallthrough
CT: control target
= control target key end

     0   :  { %9 = vsyncpa [#allocation3], 0  ;;  %s246_s0 = inlined_call_operand.vmem [shape: f32[8,32], index: 0, kind: input, shape index: {}]   ;;  %s247_s1 = inlined_call_operand.vmem [shape: s32[8,1], index: 1, kind: input, shape index: {}]   ;;  %s248_s2 = inlined_call_operand.hbm [shape: f32[1,8,128], index: 2, kind: output, shape index: {0}]   ;;  %s249_s3 = inlined_call_operand.hbm [shape: f32[1,8,128], index: 3, kind: output, shape index: {1}]  }
   0x1   :  { %v16_v0 = vld [vmem:[%s247_s1] sm:$0xff] }
   0x2   :  { %10 = vsyncpa [#allocation5], 0  ;;  %v192_v1 = vmov 0   ;;  %v26_v2 = vlaneseq  ;;  %v15_v4 = vld [vmem:[%s246_s0] sm:$0xff]  ;;  %vm33_vm0 = vcmask 261120   ;;  %vm66_vm2 = vcmp.ne.s32.totalorder %v16_v0, 4294967196 }
   0x3   :  { %133 = vset.pattern.permute.xlu0 %v192_v1  ;;  %v193_v35 = vmov 0.0   ;;  %vm71_vm3 = vcmask 7168   ;;  %s194_s0 = smov [#allocation2]   ;;  %s195_s17 = smov [#allocation4]  }
   0x4   :  { %29 = vperm.xlu0 %133, %v16_v0   ;;  %v27_v3 = vand.u32 127, %v26_v2  ;;  %v124_v36 = vsel %vm66_vm2, 1.0, %v193_v35  ;;  %s102_s1 = sshll.u32 %s194_s0, 4  ;;  %s112_s18 = sshll.u32 %s195_s17, 4  ;;  %s103_s1 = int_to_ptr.vmem [resolvable:$true] %s102_s1  ;;  %s113_s18 = int_to_ptr.vmem [resolvable:$true] %s112_s18 }
   0x5   :  { %v82_v40 = vsel %vm71_vm3, %v124_v36, 0.0  ;;  %s144_s19 = scalar_lea.vmem %s103_s1, 128  ;;  %p149_p1 = scmp.lt.s32.totalorder %s103_s1, %s103_s1 }
   0x6   :  { %p145_p0 = scmp.ne.s32.totalorder %s103_s1, %s144_s19  ;;  %p150_p2 = scmp.lt.s32.totalorder %s144_s19, %s144_s19 }
   0x8   :  { %p151_p3 = por %p150_p2, %p149_p1 }
   0xa   :  { %p152_p4 = pnand %p151_p3, %p145_p0 }
  0x83   :  { %v30_v5 = vpop.permute.xlu0 %29 }
  0x84   :  { %vm31_vm1 = vcmp.eq.s32.totalorder %v27_v3, %v30_v5 }
  0x85   :  { %v37_v6 = vsel %vm31_vm1, %v15_v4, 0.0  ;;  %v32_v7 = vsel %vm31_vm1, -inf, %v15_v4 }
  0x86   :  { %v38_v8 = vsel %vm33_vm0, %v37_v6, 0.0  ;;  %v34_v9 = vsel %vm33_vm0, %v32_v7, -inf }
  0x87   :  { %39 = vadd.xlane.f32.xlu1 %v38_v8  ;;  %35 = vmax.xlane.f32.xlu0 %v34_v9 }
 0x114   :  { %v40_v10 = vpop.xlane.xlu1 %39  ;;  %v36_v11 = vpop.xlane.xlu0 %35 }
 0x115   :  { %v41_v12 = vmax.f32 %v36_v11, %v40_v10 }
 0x117   :  { %v42_v13 = vsub.f32 %v15_v4, %v41_v12 }
 0x119   :  { %v43_v14 = vmul.f32 1.442695, %v42_v13 }
 0x11b   :  { %134 = vpow2.f32 %v43_v14 }
 0x125   :  { %v135_v15 = vpop.eup %134 }
 0x126   :  { %v45_v16 = vsel %vm33_vm0, %v135_v15, 0.0 }
 0x127   :  { %46 = vadd.xlane.f32.xlu1 %v45_v16 }
 0x1b4   :  { %v47_v17 = vpop.xlane.xlu1 %46 }
 0x1b5   :  { %136 = vlog2.f32 %v47_v17 }
 0x1bf   :  { %v137_v18 = vpop.eup %136 }
 0x1c0   :  { %v49_v19 = vmul.f32 0.6931472, %v137_v18 }
 0x1c2   :  { %v50_v20 = vadd.f32 %v49_v19, %v41_v12 }
 0x1c4   :  { %v51_v21 = vsub.f32 %v40_v10, %v50_v20 }
 0x1c6   :  { %v52_v22 = vmul.f32 1.442695, %v51_v21 }
 0x1c8   :  { %138 = vpow2.f32 %v52_v22 }
 0x1d2   :  { %v139_v23 = vpop.eup %138 }
 0x1d3   :  { %v54_v24 = vsub.f32 1.0, %v139_v23 }
 0x1d5   :  { %v55_v25 = vadd.f32 %v54_v24, %v36_v11 }
 0x1d7   :  { %v56_v26 = vsub.f32 %v55_v25, %v40_v10 }
 0x1d9   :  { %v58_v27 = vand.u32 2147483647, %v56_v26  ;;  %v57_v33 = vmax.f32 %v56_v26, 0.0 }
 0x1db   :  { %v59_v28 = vsub.f32 0.0, %v58_v27 }
 0x1dd   :  { %v60_v29 = vmul.f32 1.442695, %v59_v28 }
 0x1df   :  { %140 = vpow2.f32 %v60_v29 }
 0x1e9   :  { %v141_v30 = vpop.eup %140 }
 0x1ea   :  { %v62_v31 = vadd.f32 1.0, %v141_v30 }
 0x1ec   :  { %142 = vlog2.f32 %v62_v31 }
 0x1f6   :  { %v143_v32 = vpop.eup %142 }
 0x1f7   :  { %v64_v34 = vmul.f32 0.6931472, %v143_v32 }
 0x1f9   :  { %v65_v37 = vadd.f32 %v64_v34, %v57_v33 }
 0x1fb   :  { %v70_v38 = vmul.f32 %v124_v36, %v65_v37 }
 0x1fd   :  { %v72_v39 = vsel %vm71_vm3, %v70_v38, 0.0 }
 0x1fe   :  { %73 = vadd.xlane.f32.xlu1 %v72_v39 }
 0x202   :  { %83 = vadd.xlane.f32.xlu1 %v82_v40 }
 0x28b   :  { %v74_v41 = vpop.xlane.xlu1 %73 }
 0x28c   :  { %v75_v42 = vrot.slane %v74_v41, 4 }
 0x28e   :  { %v76_v43 = vadd.f32 %v75_v42, %v74_v41 }
 0x28f   :  { %v84_v44 = vpop.xlane.xlu1 %83 }
 0x290   :  { %v77_v45 = vrot.slane %v76_v43, 2  ;;  %v85_v46 = vrot.slane %v84_v44, 4 }
 0x292   :  { %v86_v47 = vadd.f32 %v85_v46, %v84_v44  ;;  %v78_v48 = vadd.f32 %v77_v45, %v76_v43 }
 0x294   :  { %v87_v49 = vrot.slane %v86_v47, 2  ;;  %v79_v50 = vrot.slane %v78_v48, 1 }
 0x296   :  { %v88_v51 = vadd.f32 %v87_v49, %v86_v47  ;;  %v80_v52 = vadd.f32 %v79_v50, %v78_v48 }
 0x298   :  { %125 = vpush %v80_v52  ;;  %v89_v53 = vrot.slane %v88_v51, 1 }
 0x29a   :  { %v90_v54 = vadd.f32 %v89_v53, %v88_v51 }
 0x29c   :  { %127 = vpush %v90_v54 }
 0x2c9   :  { %s126_s16 = spop %125 }
 0x2ca   :  { %v92_v55 = vstv %s126_s16 }
 0x2cb   :  { %93 = vst [vmem:[#allocation2] sm:$0xff] %v92_v55 }
 0x2cc   :  { %155 = shalt.err (!%p152_p4)
}
 0x2cd   :  { %s156_s22 = scalar_lea.hbm %s248_s2, 128 }
 0x2ce   :  { %p157_p5 = scmp.ne.s32.totalorder %s248_s2, %s156_s22  ;;  %p160_p6 = scmp.lt.u32.totalorder %s156_s22, %s248_s2 }
 0x2d0   :  { %p162_p7 = pnand %p160_p6, %p157_p5 }
 0x2d2   :  { %165 = shalt.err (!%p162_p7)
}
 0x2d3   :  { %105 = dma.vmem_to_hbm [thread:$0]  %s103_s1, 128, %s248_s2, [#allocation3]  }
 0x2d4   :  { %s128_s29 = spop %127  ;;  %s166_s30 = scalar_lea.vmem %s113_s18, 128 }
 0x2d5   :  { %v94_v56 = vstv %s128_s29  ;;  %p167_p8 = scmp.ne.s32.totalorder %s113_s18, %s166_s30  ;;  %p171_p9 = scmp.lt.s32.totalorder %s113_s18, %s113_s18 }
 0x2d6   :  { %95 = vst [vmem:[#allocation4] sm:$0xff] %v94_v56  ;;  %p172_p10 = scmp.lt.s32.totalorder %s166_s30, %s166_s30 }
 0x2d8   :  { %p173_p11 = por %p172_p10, %p171_p9 }
 0x2da   :  { %p174_p12 = pnand %p173_p11, %p167_p8 }
 0x2dc   :  { %177 = shalt.err (!%p174_p12)
}
 0x2dd   :  { %s178_s6 = scalar_lea.hbm %s249_s3, 128 }
 0x2de   :  { %p179_p13 = scmp.ne.s32.totalorder %s249_s3, %s178_s6  ;;  %p182_p0 = scmp.lt.u32.totalorder %s178_s6, %s249_s3 }
 0x2e0   :  { %p184_p1 = pnand %p182_p0, %p179_p13 }
 0x2e2   :  { %187 = shalt.err (!%p184_p1)
}
 0x2e3   :  { %115 = dma.vmem_to_hbm [thread:$0]  %s113_s18, 128, %s249_s3, [#allocation5]  }
 0x2e4   :  { %188 = dma.done.wait [#allocation3], 128  }
 0x2e5   :  { %189 = vsyncadd [#allocation3], 4294967168 }
 0x2e6   :  { %190 = dma.done.wait [#allocation5], 128  }
 0x2e7   :  { %191 = vsyncadd [#allocation5], 4294967168 }
 0x2e8   :  { %122 = vsyncpa [#allocation3], 1 }
 0x2e9   :  { %123 = vsyncpa [#allocation5], 1 }

</bundles_post_ra>
